<compile_context>
chip_gen: v6e
topology: v6e:2x2x1
jax: 0.10.0
libtpu: 0.0.40
codegen_flags: <defaults>
</compile_context>

<pallas_src>
import functools

import jax
import jax.numpy as jnp
from jax.experimental import pallas as pl
from jax.experimental.pallas import tpu as pltpu


def _vmem_limit_bytes(default=48 * 1024 * 1024):
    """Generation-aware VMEM budget: ~75% of capacity, capped, safe fallback."""
    try:
        cap = getattr(pltpu.get_tpu_info(), "vmem_capacity_bytes", None)
        if cap:
            return min(int(cap) * 3 // 4, 100 * 1024 * 1024)
    except Exception:
        pass
    return default


def _const_spec(shape):
    """Weight/bias block: constant index map -> fetched once, single-buffered."""
    n = len(shape)
    return pl.BlockSpec(shape, lambda *_, n=n: (0,) * n,
                        pipeline_mode=pl.Buffered(buffer_count=1))


def _layernorm(z, gamma, beta, eps=1e-5):
    mu = jnp.mean(z, axis=-1, keepdims=True)
    var = jnp.mean((z - mu) ** 2, axis=-1, keepdims=True)   # biased, like nn.LayerNorm
    return (z - mu) * jax.lax.rsqrt(var + eps) * gamma + beta


# --------------------------------------------------------------------------- #
# Stage 1: full-sequence K/V projection (per batch element).                  #
# --------------------------------------------------------------------------- #
def kv_project_kernel(x_ref, wk_ref, bk_ref, wv_ref, bv_ref, k_ref, v_ref, *,
                      n_heads):
    x = x_ref[...].astype(jnp.bfloat16)                        # (L, D)
    L, D = x.shape
    H = n_heads
    dh = D // H
    k = jnp.dot(x, wk_ref[...], preferred_element_type=jnp.float32) + bk_ref[...]
    v = jnp.dot(x, wv_ref[...], preferred_element_type=jnp.float32) + bv_ref[...]
    # K pre-transposed to (H, dh, L): one 2-D transpose + free major-dim split,
    # paid once per batch element instead of per query tile.
    k_ref[...] = k.T.reshape(H, dh, L).astype(k_ref.dtype)
    # V to (H, L, dh): single reshape + head-to-front transpose (minor dim kept).
    v_ref[...] = jnp.transpose(v.reshape(L, H, dh), (1, 0, 2)).astype(v_ref.dtype)


def _kv_project(x, params, n_heads, compute_dtype):
    B, L, D = x.shape
    H = n_heads
    dh = D // H
    wk = params["wk"].astype(compute_dtype)
    wv = params["wv"].astype(compute_dtype)
    bk, bv = params["bk"], params["bv"]
    return pl.pallas_call(
        functools.partial(kv_project_kernel, n_heads=H),
        out_shape=(jax.ShapeDtypeStruct((B, H, dh, L), compute_dtype),
                   jax.ShapeDtypeStruct((B, H, L, dh), compute_dtype)),
        grid_spec=pltpu.PrefetchScalarGridSpec(
            num_scalar_prefetch=0,
            grid=(B,),
            in_specs=[pl.BlockSpec((None, L, D), lambda b: (b, 0, 0)),
                      _const_spec(wk.shape), _const_spec(bk.shape),
                      _const_spec(wv.shape), _const_spec(bv.shape)],
            out_specs=(pl.BlockSpec((None, H, dh, L), lambda b: (b, 0, 0, 0)),
                       pl.BlockSpec((None, H, L, dh), lambda b: (b, 0, 0, 0)))),
        compiler_params=pltpu.CompilerParams(
            dimension_semantics=("parallel",),
            vmem_limit_bytes=_vmem_limit_bytes()),
    )(x, wk, bk, wv, bv)


# --------------------------------------------------------------------------- #
# Stage 2: attention + FFN over a fully parallel (B, n_query_tiles) grid.     #
# --------------------------------------------------------------------------- #
def encoder_layer_kernel(xq_ref, k_ref, v_ref,
                         wq_ref, bq_ref, wo_ref, bo_ref,
                         w1_ref, b1_ref, w2_ref, b2_ref,
                         g1_ref, beta1_ref, g2_ref, beta2_ref,
                         out_ref, *maybe_attn,
                         n_heads, output_attention, eps=1e-5):
    attn_ref = maybe_attn[0] if output_attention else None
    bf16 = jnp.bfloat16

    x_q = xq_ref[...]                                          # (Lt, D) f32
    Lt, D = x_q.shape
    H = n_heads
    dh = D // H

    # ---- Q projection; 1/sqrt(dh) folded into q before the bf16 cast --------
    q = jnp.dot(x_q.astype(bf16), wq_ref[...],
                preferred_element_type=jnp.float32) + bq_ref[...]
    q = (q * (dh ** -0.5)).astype(bf16)
    q3 = jnp.transpose(q.reshape(Lt, H, dh), (1, 0, 2))        # (H, Lt, dh)

    k3 = k_ref[...]                                            # (H, dh, L) bf16
    v3 = v_ref[...]                                            # (H, L, dh) bf16

    # ---- head-batched attention (both einsums in transpose-free MXU form) ---
    scores = jnp.einsum('hqd,hdk->hqk', q3, k3,
                        preferred_element_type=jnp.float32)    # (H, Lt, L) f32
    scores = scores - jnp.max(scores, axis=-1, keepdims=True)
    # NOTE: exp kept in f32 (v5e has no bf16 EUP; bf16 exp is a v6e/v7x option).
    p = jnp.exp(scores)                                        # unnormalized probs
    inv = pl.reciprocal(jnp.sum(p, axis=-1, keepdims=True), approx=True)

    o3 = jnp.einsum('hqk,hkd->hqd', p.astype(bf16), v3,
                    preferred_element_type=jnp.float32)        # (H, Lt, dh) f32
    o3 = o3 * inv                                              # normalize small tensor
    if output_attention:
        # bf16 writeback halves the O(L^2) HBM traffic; approx reciprocal error
        # (~2^-12) is below bf16 resolution.
        attn_ref[...] = (p * inv).astype(attn_ref.dtype)

    # ---- merge heads (ONE transpose+reshape) + output projection (K = D) ----
    o = jnp.transpose(o3, (1, 0, 2)).reshape(Lt, D)
    attn_out = jnp.dot(o.astype(bf16), wo_ref[...],
                       preferred_element_type=jnp.float32) + bo_ref[...]

    # ---- residual + LayerNorm1 (dropout = identity, eval mode) ---------------
    x1 = _layernorm(x_q + attn_out, g1_ref[...], beta1_ref[...], eps)

    # ---- FFN: conv1(1x1) -> relu -> conv2(1x1) folded into matmuls -----------
    y = jnp.dot(x1.astype(bf16), w1_ref[...],
                preferred_element_type=jnp.float32) + b1_ref[...]
    y = jnp.maximum(y, 0.0)
    y = jnp.dot(y.astype(bf16), w2_ref[...],
                preferred_element_type=jnp.float32) + b2_ref[...]

    # ---- residual + LayerNorm2 ------------------------------------------------
    out_ref[...] = _layernorm(x1 + y, g2_ref[...], beta2_ref[...], eps)


MAIN_PARAMS = ["wq", "bq", "wo", "bo", "w1", "b1", "w2", "b2",
               "g1", "beta1", "g2", "beta2"]
MATRIX_PARAMS = {"wq", "wk", "wv", "wo", "w1", "w2"}


def encoder_layer(x, params, n_heads, *, l_tile=None, output_attention=True,
                  compute_dtype=jnp.bfloat16, attn_dtype=jnp.bfloat16):
    B, L, D = x.shape
    H = n_heads
    assert D % H == 0, "d_model must be divisible by n_heads"
    dh = D // H

    # Query-tile size: 256 fills the 256-row MXU on v6e/v7x (sweep 128/256/512;
    # 128 is already matched on v5e).  Falls back to a divisor of L.
    if l_tile is None:
        if L <= 256:
            l_tile = L
        else:
            l_tile = next((c for c in (256, 128, 64, 32, 16, 8) if L % c == 0), L)
    assert L % l_tile == 0, "seq_len must be divisible by the query tile"
    assert l_tile == L or l_tile % 8 == 0
    nq = L // l_tile

    # Stage 1: K/V projection (removes the per-batch qi==0 bubble from stage 2).
    k_hbm, v_hbm = _kv_project(x, params, H, compute_dtype)

    # Stage 2 specs.  x is read only as query tiles (no duplicate full-seq DMA);
    # K/V blocks are constant across qi, so they stay resident per batch element.
    in_specs = [
        pl.BlockSpec((None, l_tile, D), lambda b, qi: (b, qi, 0)),     # query tile
        pl.BlockSpec((None, H, dh, L), lambda b, qi: (b, 0, 0, 0)),    # K (H, dh, L)
        pl.BlockSpec((None, H, L, dh), lambda b, qi: (b, 0, 0, 0)),    # V (H, L, dh)
    ]
    weights = []
    for name in MAIN_PARAMS:
        w = params[name]
        if name in MATRIX_PARAMS:
            w = w.astype(compute_dtype)     # bf16 weights -> half the DMA bytes
        weights.append(w)
        in_specs.append(_const_spec(w.shape))

    out_specs = [pl.BlockSpec((None, l_tile, D), lambda b, qi: (b, qi, 0))]
    out_shape = [jax.ShapeDtypeStruct((B, L, D), jnp.float32)]
    if output_attention:
        out_specs.append(pl.BlockSpec((None, H, l_tile, L),
                                      lambda b, qi: (b, 0, qi, 0)))
        out_shape.append(jax.ShapeDtypeStruct((B, H, L, L), attn_dtype))

    kernel = functools.partial(encoder_layer_kernel, n_heads=H,
                               output_attention=output_attention)

    outs = pl.pallas_call(
        kernel,
        out_shape=tuple(out_shape),
        grid_spec=pltpu.PrefetchScalarGridSpec(
            num_scalar_prefetch=0,
            grid=(B, nq),
            in_specs=in_specs,
            out_specs=tuple(out_specs)),
        compiler_params=pltpu.CompilerParams(
            dimension_semantics=("parallel", "parallel"),   # no qi==0 init -> safe
            vmem_limit_bytes=_vmem_limit_bytes()),
    )(x, k_hbm, v_hbm, *weights)

    if output_attention:
        return outs[0], outs[1]
    return outs[0], None


# --------------------------------------------------------------------------- #
# Pure-JAX f32 reference (mirrors the PyTorch forward in eval mode).           #
# --------------------------------------------------------------------------- #
def encoder_layer_ref(x, p, n_heads, eps=1e-5):
    B, L, D = x.shape
    dh = D // n_heads
    q = (x @ p["wq"] + p["bq"]).reshape(B, L, n_heads, dh)
    k = (x @ p["wk"] + p["bk"]).reshape(B, L, n_heads, dh)
    v = (x @ p["wv"] + p["bv"]).reshape(B, L, n_heads, dh)
    scores = jnp.einsum("blhe,bshe->bhls", q, k) / jnp.sqrt(dh)
    A = jax.nn.softmax(scores, axis=-1)
    o = jnp.einsum("bhls,bshd->blhd", A, v).reshape(B, L, D)
    o = o @ p["wo"] + p["bo"]
    x1 = _layernorm(x + o, p["g1"], p["beta1"], eps)
    y = jax.nn.relu(x1 @ p["w1"] + p["b1"])
    y = y @ p["w2"] + p["b2"]
    return _layernorm(x1 + y, p["g2"], p["beta2"], eps), A


def init_params(key, d_model, d_ff):
    names_shapes = [
        ("wq", (d_model, d_model)), ("bq", (1, d_model)),
        ("wk", (d_model, d_model)), ("bk", (1, d_model)),
        ("wv", (d_model, d_model)), ("bv", (1, d_model)),
        ("wo", (d_model, d_model)), ("bo", (1, d_model)),
        ("w1", (d_model, d_ff)),    ("b1", (1, d_ff)),     # conv1 (k=1), transposed
        ("w2", (d_ff, d_model)),    ("b2", (1, d_model)),  # conv2 (k=1), transposed
    ]
    params = {}
    keys = jax.random.split(key, len(names_shapes))
    for (name, shape), k in zip(names_shapes, keys):
        params[name] = 0.05 * jax.random.normal(k, shape, dtype=jnp.float32)
    # LayerNorm affine params (PyTorch default init: gamma=1, beta=0)
    params["g1"] = jnp.ones((1, d_model), jnp.float32)
    params["beta1"] = jnp.zeros((1, d_model), jnp.float32)
    params["g2"] = jnp.ones((1, d_model), jnp.float32)
    params["beta2"] = jnp.zeros((1, d_model), jnp.float32)
    return params


if __name__ == "__main__":
    B, L, D, H = 2, 16, 32, 4
    d_ff = 4 * D
    L_TILE = 8    # 2 query tiles per sequence -> exercises tiled attention path

    key = jax.random.PRNGKey(0)
    kx, kp = jax.random.split(key)
    x = jax.random.normal(kx, (B, L, D), dtype=jnp.float32)
    params = init_params(kp, D, d_ff)

    out, attn = encoder_layer(x, params, n_heads=H, l_tile=L_TILE,
                              output_attention=True)
    jax.block_until_ready((out, attn))

    out_ref, attn_ref_v = encoder_layer_ref(x, params, n_heads=H)
    # bf16 matmul operands / K-V / stored attn + approx reciprocal -> relaxed tols.
    assert jnp.allclose(out, out_ref, atol=3e-2, rtol=3e-2), "output mismatch"
    assert jnp.allclose(attn.astype(jnp.float32), attn_ref_v,
                        atol=3e-2, rtol=3e-2), "attention mismatch"

    # Attention-probability writeback disabled (saves the O(L^2) HBM store path).
    out2, attn2 = encoder_layer(x, params, n_heads=H, l_tile=L_TILE,
                                output_attention=False)
    jax.block_until_ready(out2)
    assert attn2 is None
    assert jnp.allclose(out2, out_ref, atol=3e-2, rtol=3e-2), "no-attn-output mismatch"

    print("KERNEL_OK")
</pallas_src>

<mosaic_0001>
module attributes {stable_mosaic.version = 11 : i64} {
  func.func @kv_project_kernel(%arg0: i32, %arg1: memref<1x16x32xf32, #tpu.memory_space<vmem>>, %arg2: memref<32x32xbf16, #tpu.memory_space<vmem>>, %arg3: memref<1x32xf32, #tpu.memory_space<vmem>>, %arg4: memref<32x32xbf16, #tpu.memory_space<vmem>>, %arg5: memref<1x32xf32, #tpu.memory_space<vmem>>, %arg6: memref<1x4x8x16xbf16, #tpu.memory_space<vmem>>, %arg7: memref<1x4x16x8xbf16, #tpu.memory_space<vmem>>) attributes {dimension_semantics = [#tpu.dimension_semantics<parallel>], iteration_bounds = array<i64: 2>, scalar_prefetch = 0 : i64, scratch_operands = 0 : i64, tpu.core_type = #tpu.core_type<tc>, window_params = [{transform_indices = @transform_0, window_bounds = array<i64: 1, 16, 32>}, {pipeline_mode = #tpu.pipeline_mode<synchronous>, transform_indices = @transform_1, window_bounds = array<i64: 32, 32>}, {pipeline_mode = #tpu.pipeline_mode<synchronous>, transform_indices = @transform_2, window_bounds = array<i64: 1, 32>}, {pipeline_mode = #tpu.pipeline_mode<synchronous>, transform_indices = @transform_3, window_bounds = array<i64: 32, 32>}, {pipeline_mode = #tpu.pipeline_mode<synchronous>, transform_indices = @transform_4, window_bounds = array<i64: 1, 32>}, {transform_indices = @transform_5, window_bounds = array<i64: 1, 4, 8, 16>}, {transform_indices = @transform_6, window_bounds = array<i64: 1, 4, 16, 8>}]} {
    %c0 = arith.constant 0 : index
    %c0_0 = arith.constant 0 : index
    %c0_1 = arith.constant 0 : index
    %0 = vector.load %arg1[%c0, %c0_0, %c0_1] : memref<1x16x32xf32, #tpu.memory_space<vmem>>, vector<1x16x32xf32>
    %1 = vector.shape_cast %0 : vector<1x16x32xf32> to vector<16x32xf32>
    %2 = arith.truncf %1 : vector<16x32xf32> to vector<16x32xbf16>
    %c0_2 = arith.constant 0 : index
    %c0_3 = arith.constant 0 : index
    %3 = vector.load %arg2[%c0_2, %c0_3] : memref<32x32xbf16, #tpu.memory_space<vmem>>, vector<32x32xbf16>
    %cst = arith.constant dense<0.000000e+00> : vector<16x32xf32>
    %4 = tpu.matmul %2, %3, %cst {dimension_numbers = #tpu.dot_dimension_numbers<[1], [0], [0], [1], [0, 0, 1, 1], [], []>} : vector<16x32xbf16>, vector<32x32xbf16>, vector<16x32xf32> -> vector<16x32xf32>
    %c0_4 = arith.constant 0 : index
    %c0_5 = arith.constant 0 : index
    %5 = vector.load %arg3[%c0_4, %c0_5] : memref<1x32xf32, #tpu.memory_space<vmem>>, vector<1x32xf32>
    %6 = vector.broadcast %5 : vector<1x32xf32> to vector<16x32xf32>
    %7 = arith.addf %4, %6 : vector<16x32xf32>
    %c0_6 = arith.constant 0 : index
    %c0_7 = arith.constant 0 : index
    %8 = vector.load %arg4[%c0_6, %c0_7] : memref<32x32xbf16, #tpu.memory_space<vmem>>, vector<32x32xbf16>
    %cst_8 = arith.constant dense<0.000000e+00> : vector<16x32xf32>
    %9 = tpu.matmul %2, %8, %cst_8 {dimension_numbers = #tpu.dot_dimension_numbers<[1], [0], [0], [1], [0, 0, 1, 1], [], []>} : vector<16x32xbf16>, vector<32x32xbf16>, vector<16x32xf32> -> vector<16x32xf32>
    %c0_9 = arith.constant 0 : index
    %c0_10 = arith.constant 0 : index
    %10 = vector.load %arg5[%c0_9, %c0_10] : memref<1x32xf32, #tpu.memory_space<vmem>>, vector<1x32xf32>
    %11 = vector.broadcast %10 : vector<1x32xf32> to vector<16x32xf32>
    %12 = arith.addf %9, %11 : vector<16x32xf32>
    %13 = tpu.transpose %7, [1, 0] : vector<16x32xf32> -> vector<32x16xf32>
    %14 = vector.shape_cast %13 : vector<32x16xf32> to vector<4x8x16xf32>
    %15 = arith.truncf %14 : vector<4x8x16xf32> to vector<4x8x16xbf16>
    %c0_11 = arith.constant 0 : index
    %c0_12 = arith.constant 0 : index
    %c0_13 = arith.constant 0 : index
    %c0_14 = arith.constant 0 : index
    %16 = vector.load %arg6[%c0_11, %c0_12, %c0_13, %c0_14] : memref<1x4x8x16xbf16, #tpu.memory_space<vmem>>, vector<1x4x8x16xbf16>
    %17 = vector.shape_cast %16 : vector<1x4x8x16xbf16> to vector<4x8x16xbf16>
    %18 = vector.shape_cast %15 : vector<4x8x16xbf16> to vector<1x4x8x16xbf16>
    tpu.vector_store %arg6[%c0_11, %c0_12, %c0_13, %c0_14], %18 {strides = array<i32>} : memref<1x4x8x16xbf16, #tpu.memory_space<vmem>>, vector<1x4x8x16xbf16>,
    %19 = vector.shape_cast %12 : vector<16x32xf32> to vector<16x4x8xf32>
    %20 = tpu.transpose %19, [1, 0, 2] : vector<16x4x8xf32> -> vector<4x16x8xf32>
    %21 = arith.truncf %20 : vector<4x16x8xf32> to vector<4x16x8xbf16>
    %c0_15 = arith.constant 0 : index
    %c0_16 = arith.constant 0 : index
    %c0_17 = arith.constant 0 : index
    %c0_18 = arith.constant 0 : index
    %22 = vector.load %arg7[%c0_15, %c0_16, %c0_17, %c0_18] : memref<1x4x16x8xbf16, #tpu.memory_space<vmem>>, vector<1x4x16x8xbf16>
    %23 = vector.shape_cast %22 : vector<1x4x16x8xbf16> to vector<4x16x8xbf16>
    %24 = vector.shape_cast %21 : vector<4x16x8xbf16> to vector<1x4x16x8xbf16>
    tpu.vector_store %arg7[%c0_15, %c0_16, %c0_17, %c0_18], %24 {strides = array<i32>} : memref<1x4x16x8xbf16, #tpu.memory_space<vmem>>, vector<1x4x16x8xbf16>,
    return
  }
  func.func @transform_0(%arg0: i32) -> (i32, i32, i32) {
    %c0_i32 = arith.constant 0 : i32
    %c0_i32_0 = arith.constant 0 : i32
    %c0_i32_1 = arith.constant 0 : i32
    return %arg0, %c0_i32, %c0_i32_0 : i32, i32, i32
  }
  func.func @transform_1(%arg0: i32) -> (i32, i32) {
    %c0_i32 = arith.constant 0 : i32
    %c0_i32_0 = arith.constant 0 : i32
    %c0_i32_1 = arith.constant 0 : i32
    return %c0_i32, %c0_i32_0 : i32, i32
  }
  func.func @transform_2(%arg0: i32) -> (i32, i32) {
    %c0_i32 = arith.constant 0 : i32
    %c0_i32_0 = arith.constant 0 : i32
    %c0_i32_1 = arith.constant 0 : i32
    return %c0_i32, %c0_i32_0 : i32, i32
  }
  func.func @transform_3(%arg0: i32) -> (i32, i32) {
    %c0_i32 = arith.constant 0 : i32
    %c0_i32_0 = arith.constant 0 : i32
    %c0_i32_1 = arith.constant 0 : i32
    return %c0_i32, %c0_i32_0 : i32, i32
  }
  func.func @transform_4(%arg0: i32) -> (i32, i32) {
    %c0_i32 = arith.constant 0 : i32
    %c0_i32_0 = arith.constant 0 : i32
    %c0_i32_1 = arith.constant 0 : i32
    return %c0_i32, %c0_i32_0 : i32, i32
  }
  func.func @transform_5(%arg0: i32) -> (i32, i32, i32, i32) {
    %c0_i32 = arith.constant 0 : i32
    %c0_i32_0 = arith.constant 0 : i32
    %c0_i32_1 = arith.constant 0 : i32
    %c0_i32_2 = arith.constant 0 : i32
    return %arg0, %c0_i32, %c0_i32_0, %c0_i32_1 : i32, i32, i32, i32
  }
  func.func @transform_6(%arg0: i32) -> (i32, i32, i32, i32) {
    %c0_i32 = arith.constant 0 : i32
    %c0_i32_0 = arith.constant 0 : i32
    %c0_i32_1 = arith.constant 0 : i32
    %c0_i32_2 = arith.constant 0 : i32
    return %arg0, %c0_i32, %c0_i32_0, %c0_i32_1 : i32, i32, i32, i32
  }
}

</mosaic_0001>

<bundles_post_ra>
// kernel: tpu_custom_call.1
= control target key start
LH: loop header
LB: loop body
LE: loop exit
PB: predicated region body
PF: predicated region fallthrough
CT: control target
= control target key end

     0   :  { %12 = vsyncpa [#allocation3], 0  ;;  %s1540_s0 = inlined_call_operand.hbm [shape: f32[2,16,32], index: 0, kind: input, shape index: {}]   ;;  %s1541_s1 = inlined_call_operand.hbm [shape: bf16[32,32], index: 1, kind: input, shape index: {}]   ;;  %s1542_s2 = inlined_call_operand.vmem [shape: f32[1,32], index: 2, kind: input, shape index: {}]   ;;  %s1543_s3 = inlined_call_operand.hbm [shape: bf16[32,32], index: 3, kind: input, shape index: {}]   ;;  %s1544_s4 = inlined_call_operand.vmem [shape: f32[1,32], index: 4, kind: input, shape index: {}]   ;;  %s1545_s5 = inlined_call_operand.hbm [shape: bf16[2,4,8,16], index: 5, kind: output, shape index: {0}]   ;;  %s1546_s6 = inlined_call_operand.vmem [shape: bf16[2,4,16,8], index: 6, kind: output, shape index: {1}]  }
   0x1   :  { %14 = vsyncpa [#allocation3 + $0x1], 0 }
   0x2   :  { %15 = vsyncpa [#allocation6], 0 }
   0x3   :  { %16 = vsyncpa [#allocation4], 0 }
   0x4   :  { %18 = vsyncpa [#allocation4 + $0x1], 0  ;;  %s1320_s21 = smov 0   ;;  %s1322_s22 = smov 0  }
   0x5   :  { %s1324_s23 = smov 0   ;;  %s1326_s24 = smov 0  }
   0x6 LB: > { %s1341_s25 = sadd.s32 4294967295, %s1266_s24   ;;  %s961_s26 = sadd.s32 4294967294, %s1266_s24   ;;  %s1266_s24 = sphi %s1326_s24, %s1568_s24   ;;  %s1262_s23 = sphi %s1324_s23, %s1567_s23   ;;  %s1258_s22 = sphi %s1322_s22, %s1566_s22   ;;  %s1254_s21 = sphi %s1320_s21, %s1565_s21  }
   0x7   : > { %p44_p0 = scmp.ne.s32.totalorder %s1258_s22, %s1254_s21  ;;  %p1547_p1 = scmp.eq.s32.totalorder %s1341_s25, 0 }
   0x8   : > { %p158_p3 = scmp.eq.s32.totalorder %s961_s26, 1  ;;  %p962_p5 = scmp.ge.s32.totalorder %s1266_s24, 1 }
   0x9   : > { %p1350_p4 = por %p1547_p1, %p44_p0  ;;  %p191_p7 = scmp.lt.s32.totalorder %s1266_s24, 3 }
   0xa   : > { %p1355_p6 = por %p158_p3, %p44_p0  ;;  %s1268_s30 = smov [#allocation5]  }
   0xb   : > { %s1551_s27 = scalar_select %p1350_p4, 1, 0 }
   0xc   : > { %s1552_s28 = scalar_select %p1355_p6, 1, 0 }
   0xd   : > { %p1360_p8 = pnand %p962_p5, %p191_p7  ;;  %s203_s7 = sshll.u32 %s1268_s30, 4  ;;  %s204_s7 = int_to_ptr.vmem [resolvable:$true] %s203_s7 }
   0xe   : > { %s1269_s9 = smov [#allocation7]   ;;  %s1129_s11 = scalar_lea.vmem %s204_s7, 256 }
   0xf   : > { %s1553_s29 = scalar_select %p1360_p8, 1, 0 }
  0x10   : > { %p1046_p9 = pneg %p1360_p8  ;;  %s219_s10 = sshll.u32 %s1269_s9, 4  ;;  %s220_s10 = int_to_ptr.vmem [resolvable:$true] %s219_s10 }
  0x11   : > { %p1130_p13 = scmp.ne.s32.totalorder %s204_s7, %s1129_s11  ;;  %p1137_p5 = scmp.lt.s32.totalorder %s204_s7, %s204_s7 }
  0x12   : > { %p1369_p11 = pnand %p1046_p9, %p1547_p1  ;;  %p1138_p7 = scmp.lt.s32.totalorder %s1129_s11, %s1129_s11 }
  0x14   : > { %p1120_p12 = pneg %p1369_p11  ;;  %p1139_p10 = por %p1138_p7, %p1137_p5 }
  0x16   : > { %p1132_p0 = pnand %p1130_p13, %p1120_p12 }
  0x18   : > { %p1133_p3 = pneg %p1132_p0 }
  0x1a   : > { %p1140_p9 = pnand %p1139_p10, %p1133_p3 }
  0x1c   : > { %1143 = shalt.err (!%p1140_p9)
}
  0x1d   : > { %s1270_s12 = smov 64   ;;  %s1271_s13 = smov 4  }
  0x1e   : > { %1049 = dma.hbm_to_vmem [thread:$0]  (!%p1369_p11), %s1541_s1, 256, %s204_s7, [#allocation6], %s1270_s12, %s1270_s12, %s1271_s13  }
  0x1f   : > { %s1155_s16 = scalar_lea.vmem %s220_s10, 256  ;;  %p1163_p2 = scmp.lt.s32.totalorder %s220_s10, %s220_s10 }
  0x20   : > { %p1156_p1 = scmp.ne.s32.totalorder %s220_s10, %s1155_s16  ;;  %p1164_p6 = scmp.lt.s32.totalorder %s1155_s16, %s1155_s16 }
  0x22   : > { %p1158_p13 = pnand %p1156_p1, %p1120_p12  ;;  %p1165_p5 = por %p1164_p6, %p1163_p2 }
  0x24   : > { %p1159_p0 = pneg %p1158_p13 }
  0x26   : > { %p1166_p10 = pnand %p1165_p5, %p1159_p0 }
  0x28   : > { %1169 = shalt.err (!%p1166_p10)
}
  0x29   : > { %1052 = dma.hbm_to_vmem [thread:$0]  (!%p1369_p11), %s1543_s3, 256, %s220_s10, [#allocation6], %s1270_s12, %s1270_s12, %s1271_s13  }
  0x2a   : > { %s1392_s19 = sadd.s32 1, %s1266_s24   ;;  %s31_s20 = sadd.s32 1, %s1262_s23 }
  0x2b   : > { %s28_s26 = ssub.s32 %s1266_s24, %s1392_s19  ;;  %p38_p1 = scmp.ne.s32.totalorder %s1262_s23, %s1258_s22 }
  0x2c   : > { %p29_p2 = scmp.eq.s32.totalorder %s28_s26, 0  ;;  %p39_p6 = scmp.eq.s32.totalorder %s1266_s24, 0 }
  0x2d   : > { %p1555_p12 = scmp.eq.s32.totalorder %s1341_s25, 1  ;;  %p1063_p7 = scmp.lt.s32.totalorder %s1266_s24, 2 }
  0x2e   : > { %s1408_s7 = scalar_select %p29_p2, %s1262_s23, %s31_s20  }
  0x2f   : > { %p1402_p3 = por %p1555_p12, %p38_p1  ;;  %p40_p9 = por %p39_p6, %p38_p1 }
  0x30   : > { %s236_s8 = sand.u32 1, %s1262_s23   ;;  %s1001_s10 = sshll.u32 %s1266_s24, 8 }
  0x31   : > { %s1556_s30 = scalar_select %p1402_p3, 1, 0 }
  0x32   : > { %s966_s9 = sshll.u32 %s236_s8, 4  ;;  %s1415_s13 = scalar_lea.hbm %s1540_s0, %s1001_s10 }
  0x33   : > { %s240_s14 = scalar_lea.vmem [#allocation2], %s966_s9  ;;  %p1419_p11 = pnand %p1063_p7, %p40_p9 }
  0x34   : > { %s247_s15 = sshll.u32 %s240_s14, 4  ;;  %s1423_s17 = scalar_lea.sflag [#allocation3], %s236_s8  ;;  %s1417_s15 = int_to_ptr.vmem [resolvable:$true] %s247_s15 }
  0x35   : > { %s1170_s18 = scalar_lea.hbm %s1415_s13, 256  ;;  %p1172_p0 = pneg %p1419_p11 }
  0x36   : > { %p1171_p13 = scmp.ne.s32.totalorder %s1415_s13, %s1170_s18  ;;  %s1175_s9 = scalar_lea.hbm %s1540_s0, 512 }
  0x37   : > { %p1176_p1 = scmp.lt.s32.totalorder %s1415_s13, %s1540_s0  ;;  %p1177_p2 = scmp.lt.s32.totalorder %s1175_s9, %s1170_s18 }
  0x38   : > { %p1173_p5 = pnand %p1172_p0, %p1171_p13 }
  0x39   : > { %p1178_p6 = por %p1177_p2, %p1176_p1 }
  0x3a   : > { %p1174_p10 = pneg %p1173_p5 }
  0x3c   : > { %p1179_p12 = pnand %p1178_p6, %p1174_p10 }
  0x3e   : > { %1182 = shalt.err (!%p1179_p12)
}
  0x3f   : > { %s1183_s8 = scalar_lea.vmem %s1417_s15, 256  ;;  %s1272_s12 = smov [#allocation2]  }
  0x40   : > { %p1184_p7 = scmp.ne.s32.totalorder %s1417_s15, %s1183_s8  ;;  %s1188_s14 = sshll.u32 %s1272_s12, 4  ;;  %s1189_s14 = int_to_ptr.vmem [resolvable:$false] %s1188_s14 }
  0x41   : > { %s1190_s20 = scalar_lea.vmem %s1189_s14, 512  ;;  %p1191_p5 = scmp.lt.s32.totalorder %s1417_s15, %s1189_s14 }
  0x42   : > { %p1186_p9 = pnand %p1184_p7, %p1172_p0  ;;  %p1192_p3 = scmp.lt.s32.totalorder %s1190_s20, %s1183_s8 }
  0x44   : > { %p1187_p13 = pneg %p1186_p9  ;;  %p1193_p4 = por %p1192_p3, %p1191_p5 }
  0x46   : > { %p1194_p8 = pnand %p1193_p4, %p1187_p13 }
  0x48   : > { %1197 = shalt.err (!%p1194_p8)
}
  0x49   : > { %s1273_s18 = smov 128   ;;  %s1274_s26 = smov 8  }
  0x4a   : > { %1056 = dma.hbm_to_vmem [thread:$0]  (!%p1419_p11), %s1415_s13, 256, %s1417_s15, %s1423_s17, %s1273_s18, %s1273_s18, %s1274_s26  }
  0x4b   : > { %p1558_p0 = scmp.ne.s32.totalorder %s1553_s29, 0 }
  0x4c   : > { %s1447_s9 = sand.u32 (!%p1558_p0), 1, %s1258_s22   ;;  %p1559_p4 = scmp.ne.s32.totalorder (!%p1558_p0), %s1551_s27, 0 }
  0x4d   : > { %259 = sbr.rel (%p1558_p0) target bundleno = 482 (0x1e2), region = 40  ;;  %s970_s10 = sshll.u32 (!%p1558_p0), %s1447_s9, 4 }
  0x4e   : > { %s262_s11 = scalar_lea.sflag (!%p1558_p0), [#allocation3], %s1447_s9  ;;  %s265_s8 = scalar_lea.vmem (!%p1558_p0), [#allocation2], %s970_s10 }
  0x52   : > { %1241 = dma.done.wait (%p1559_p4), %s262_s11, 256  }
  0x53   : > { %1243 = vsyncadd (%p1559_p4), %s262_s11, 4294967040  ;;  %p1560_p8 = scmp.eq.s32.totalorder %s1341_s25, 0 }
  0x55   : > { %1245 = dma.done.wait (%p1560_p8), [#allocation6], 512   ;;  %p1561_p3 = pmov %p1560_p8 }
  0x56   : > { %v1275_v0 = vmov 0.0   ;;  %vm1276_vm0 = vmmov 0   ;;  %v1114_v1 = vld [vmem:[#allocation7 + $0x8] sm:$0xff]   ;;  %v1115_v2 = vld [vmem:[#allocation7] sm:$0xff]   ;;  %v1116_v5 = vld [vmem:[#allocation5 + $0x8] sm:$0xff]   ;;  %vm339_vm1 = vcmask 261120   ;;  %v514_v24 = vlaneseq }
  0x57   : > { %1247 = vsyncadd (%p1561_p3), [#allocation6], 4294966784  ;;  %1026 = vmatprep.subr.bf16.mxu1 %v1275_v0  ;;  %1030 = vmatprep.mubr.msk.bf16.mxu1 %vm1276_vm0, %v1275_v0  ;;  %v313_v3 = vld [vmem:[%s265_s8] sm:$0xff]  ;;  %v314_v4 = vld [vmem:[%s265_s8 + $0x8] sm:$0xff]  ;;  %s1277_s13 = smov 112   ;;  %s1278_s15 = smov 120  }
  0x58   : > { %1018 = vmatprep.subr.bf16.mxu0 %v1275_v0  ;;  %1022 = vmatprep.mubr.msk.bf16.mxu0 %vm1276_vm0, %v1275_v0  ;;  %v315_v6 = vpack.c.bf16 %v314_v4, %v313_v3  ;;  %v1117_v7 = vld [vmem:[#allocation5] sm:$0xff]   ;;  %s1279_s16 = smov 104   ;;  %v1280_v22 = vmov 1983009808   ;;  %v1281_v27 = vmov 1934713408  }
  0x59   : > { %1027 = vmatpush3.bf16.msra.mxu1 %v1114_v1  ;;  %1019 = vmatpush3.bf16.msra.mxu0 %v1116_v5  ;;  %v980_v8 = vld [vmem:[%s1544_s4] ss:$0 sm:$0xff]  ;;  %v512_v23 = vunpack.c.l.s4 %v1280_v22  ;;  %v544_v28 = vunpack.c.l.s4 %v1281_v27  ;;  %v515_v30 = vshrl.u32 %v514_v24, 7  ;;  %p307_p11 = scmp.lt.s32.totalorder %s1341_s25, 1  ;;  %vm813_vm2 = vcmask 60416   ;;  %s299_s8 = scalar_lea.vmem [#allocation8], %s970_s10 }
  0x5a   : > { %1028 = vmatprep.subr.bf16.mxu1 %v1275_v0  ;;  %1020 = vmatprep.subr.bf16.mxu0 %v1275_v0  ;;  %v976_v19 = vld [vmem:[%s1542_s2] ss:$0 sm:$0xff]  ;;  %vm484_vm3 = vcmask 125952   ;;  %s841_s27 = sshll.u32 %s299_s8, 4  ;;  %s1011_s29 = sshll.u32 %s1341_s25, 8  ;;  %s1490_s27 = int_to_ptr.vmem [resolvable:$true] %s841_s27 }
  0x5b   : > { %v513_v29 = vunpack.c.0.s8 %v512_v23  ;;  %v545_v35 = vunpack.c.0.s8 %v544_v28  ;;  %s1471_s14 = scalar_select %p307_p11, %s1341_s25, 1 }
  0x5c   : > { %s1198_s17 = scalar_lea.vmem %s1490_s27, 256  ;;  %p1562_p1 = scmp.ne.s32.totalorder %s1556_s30, 0 }
  0x5d   : > { %1029 = vmatpush3.bf16.msra.mxu1 %v1115_v2  ;;  %1021 = vmatpush3.bf16.msra.mxu0 %v1117_v7  ;;  %v516_v36 = vsub.s32 %v513_v29, %v515_v30  ;;  %v548_v47 = vsub.s32 %v545_v35, %v515_v30  ;;  %s1002_s20 = sshll.u32 %s1471_s14, 5  ;;  %p1199_p10 = scmp.ne.s32.totalorder %s1490_s27, %s1198_s17 }
  0x5e   : > { %s311_s11 = scalar_lea.vmem %s1546_s6, %s1002_s20  ;;  %s1282_s25 = smov [#allocation8]  }
  0x5f   : > { %p1200_p2 = pnand %p1199_p10, %p1562_p1  ;;  %s1202_s12 = sshll.u32 %s1282_s25, 4  ;;  %s1203_s12 = int_to_ptr.vmem [resolvable:$false] %s1202_s12 }
  0x60   : > { %1031 = vmatmul.mubr.msk.bf16.vlgmr.msra.gmra.mxu1 %vm339_vm1, %v315_v6  ;;  %1023 = vmatmul.mubr.msk.bf16.vlgmr.msra.gmra.mxu0 %vm339_vm1, %v315_v6  ;;  %s1204_s14 = scalar_lea.vmem %s1203_s12, 512  ;;  %p1205_p12 = scmp.lt.s32.totalorder %s1490_s27, %s1203_s12 }
  0x61   : > { %p1201_p6 = pneg %p1200_p2  ;;  %p1206_p7 = scmp.lt.s32.totalorder %s1204_s14, %s1198_s17 }
  0x63   : > { %p1207_p9 = por %p1206_p7, %p1205_p12 }
  0x65   : > { %p1208_p13 = pnand %p1207_p9, %p1201_p6 }
 0x120   : > { %v441_v9 = vpop.f32.mrf.mxu1  ;;  %v377_v12 = vpop.f32.mrf.mxu0 }
 0x121   : > { %v442_v10 = vadd.f32 %v980_v8, %v441_v9  ;;  %v378_v20 = vadd.f32 %v976_v19, %v377_v12 }
 0x122   : > { %v1032_v11 = vpop.f32.mrf.mxu1  ;;  %v1024_v15 = vpop.f32.mrf.mxu0 }
 0x123   : > { %497 = vrot.lane.b32.xlu1 %v442_v10, %s1277_s13  ;;  %491 = vrot.lane.b32.xlu0 %v442_v10, %s1278_s15 }
 0x124   : > { %v444_v13 = vpop.f32.mrf.mxu1  ;;  %v380_v17 = vpop.f32.mrf.mxu0 }
 0x125   : > { %v445_v14 = vadd.f32 %v980_v8, %v444_v13  ;;  %v381_v21 = vadd.f32 %v976_v19, %v380_v17 }
 0x126   : > { %v1033_v16 = vpop.f32.mrf.mxu1  ;;  %v1025_v18 = vpop.f32.mrf.mxu0 }
 0x127   : > { %499 = vrot.lane.b32.xlu1 %v445_v14, %s1277_s13  ;;  %493 = vrot.lane.b32.xlu0 %v445_v14, %s1278_s15  ;;  %s1496_s15 = scalar_lea.hbm %s1545_s5, %s1011_s29 }
 0x12b   : > { %505 = vrot.lane.b32.xlu1 %v445_v14, %s1279_s16  ;;  %503 = vrot.lane.b32.xlu0 %v442_v10, %s1279_s16  ;;  %s823_s16 = scalar_lea.sflag [#allocation4], %s1447_s9 }
 0x149   : > { %448 = vxpose.xlu0.b32.start [1/2] (short) (narrow) %v378_v20, 32 }
 0x14d   : > { %449 = vxpose.xlu0.b32.end [2/2] (short) (narrow) %v381_v21, 32 }
 0x195   : > { %v498_v25 = vpop.permute.xlu1 %497  ;;  %v492_v26 = vpop.permute.xlu0 %491 }
 0x196   : > { %v509_v37 = vcombine.low %v442_v10, %v498_v25  ;;  %v510_v38 = vcombine.high %v442_v10, %v498_v25 }
 0x198   : > { %v517_v52 = vrot.slane %v509_v37, %v516_v36  ;;  %v524_v53 = vrot.slane %v510_v38, %v516_v36 }
 0x199   : > { %v500_v31 = vpop.permute.xlu1 %499  ;;  %v494_v32 = vpop.permute.xlu0 %493 }
 0x19a   : > { %v577_v33 = vcombine.low %v445_v14, %v500_v31  ;;  %v578_v34 = vcombine.high %v445_v14, %v500_v31 }
 0x19c   : > { %v585_v45 = vrot.slane %v577_v33, %v516_v36  ;;  %v592_v46 = vrot.slane %v578_v34, %v516_v36 }
 0x19d   : > { %v506_v39 = vpop.permute.xlu1 %505  ;;  %v504_v40 = vpop.permute.xlu0 %503 }
 0x19e   : > { %v593_v41 = vcombine.low %v494_v32, %v506_v39  ;;  %v594_v42 = vcombine.high %v494_v32, %v506_v39  ;;  %v525_v43 = vcombine.low %v492_v26, %v504_v40  ;;  %v526_v44 = vcombine.high %v492_v26, %v504_v40 }
 0x1a0   : > { %v601_v48 = vrot.slane %v593_v41, %v516_v36  ;;  %v608_v49 = vrot.slane %v594_v42, %v516_v36  ;;  %v533_v50 = vrot.slane %v525_v43, %v516_v36  ;;  %v540_v51 = vrot.slane %v526_v44, %v516_v36 }
 0x1a2   : > { %v609_v54 = vcombine.low %v585_v45, %v601_v48  ;;  %v610_v55 = vcombine.high %v585_v45, %v601_v48  ;;  %v625_v56 = vcombine.low %v592_v46, %v608_v49  ;;  %v626_v57 = vcombine.high %v592_v46, %v608_v49 }
 0x1a3   : > { %v541_v58 = vcombine.low %v517_v52, %v533_v50  ;;  %v542_v59 = vcombine.high %v517_v52, %v533_v50  ;;  %v557_v60 = vcombine.low %v524_v53, %v540_v51  ;;  %v558_v61 = vcombine.high %v524_v53, %v540_v51 }
 0x1a4   : > { %v617_v62 = vrot.slane %v609_v54, %v548_v47  ;;  %v624_v63 = vrot.slane %v610_v55, %v548_v47  ;;  %v633_v0 = vrot.slane %v625_v56, %v548_v47  ;;  %v640_v1 = vrot.slane %v626_v57, %v548_v47 }
 0x1a5   : > { %v549_v2 = vrot.slane %v541_v58, %v548_v47  ;;  %v556_v3 = vrot.slane %v542_v59, %v548_v47  ;;  %v565_v4 = vrot.slane %v557_v60, %v548_v47  ;;  %v572_v5 = vrot.slane %v558_v61, %v548_v47 }
 0x1a6   : > { %v713_v6 = vcombine.low %v617_v62, %v624_v63  ;;  %v986_v7 = vcombine.high %v617_v62, %v624_v63  ;;  %v729_v8 = vcombine.low %v633_v0, %v640_v1  ;;  %v987_v9 = vcombine.high %v633_v0, %v640_v1 }
 0x1a7   : > { %v645_v10 = vcombine.low %v549_v2, %v556_v3  ;;  %v984_v11 = vcombine.high %v549_v2, %v556_v3  ;;  %v661_v12 = vcombine.low %v565_v4, %v572_v5  ;;  %v985_v13 = vcombine.high %v565_v4, %v572_v5 }
 0x1a8   : > { %v720_v14 = vrot.slane %v713_v6, %v516_v36  ;;  %v728_v15 = vrot.slane %v986_v7, %v516_v36  ;;  %v736_v16 = vrot.slane %v729_v8, %v516_v36  ;;  %v744_v17 = vrot.slane %v987_v9, %v516_v36 }
 0x1a9   : > { %v652_v18 = vrot.slane %v645_v10, %v516_v36  ;;  %v660_v19 = vrot.slane %v984_v11, %v516_v36  ;;  %v668_v20 = vrot.slane %v661_v12, %v516_v36  ;;  %v676_v21 = vrot.slane %v985_v13, %v516_v36 }
 0x1aa   : > { %v745_v22 = vcombine.low %v720_v14, %v728_v15  ;;  %v746_v23 = vcombine.high %v720_v14, %v728_v15  ;;  %v761_v24 = vcombine.low %v736_v16, %v744_v17  ;;  %v762_v25 = vcombine.high %v736_v16, %v744_v17 }
 0x1ab   : > { %v677_v26 = vcombine.low %v652_v18, %v660_v19  ;;  %v678_v27 = vcombine.high %v652_v18, %v660_v19  ;;  %v693_v28 = vcombine.low %v668_v20, %v676_v21  ;;  %v694_v29 = vcombine.high %v668_v20, %v676_v21 }
 0x1ac   : > { %v753_v30 = vrot.slane %v745_v22, %v548_v47  ;;  %v760_v31 = vrot.slane %v746_v23, %v548_v47  ;;  %v769_v32 = vrot.slane %v761_v24, %v548_v47  ;;  %v776_v33 = vrot.slane %v762_v25, %v548_v47 }
 0x1ad   : > { %v685_v34 = vrot.slane %v677_v26, %v548_v47  ;;  %v692_v35 = vrot.slane %v678_v27, %v548_v47  ;;  %v701_v37 = vrot.slane %v693_v28, %v548_v47  ;;  %v708_v38 = vrot.slane %v694_v29, %v548_v47 }
 0x1ae   : > { %v777_v39 = vcombine.low %v753_v30, %v769_v32  ;;  %v778_v40 = vcombine.high %v753_v30, %v769_v32  ;;  %v779_v36 = vcombine.low %v760_v31, %v776_v33  ;;  %v780_v41 = vcombine.high %v760_v31, %v776_v33 }
 0x1af   : > { %v709_v42 = vcombine.low %v685_v34, %v701_v37  ;;  %v710_v43 = vcombine.high %v685_v34, %v701_v37  ;;  %v711_v44 = vcombine.low %v692_v35, %v708_v38  ;;  %v712_v45 = vcombine.high %v692_v35, %v708_v38 }
 0x1b0   : > { %v1004_v46 = vpack.c.bf16 %v777_v39, %v777_v39  ;;  %v1006_v48 = vpack.c.bf16 %v778_v40, %v778_v40  ;;  %v1008_v49 = vpack.c.bf16 %v779_v36, %v779_v36  ;;  %v1010_v50 = vpack.c.bf16 %v780_v41, %v780_v41 }
 0x1b1   : > { %v1003_v51 = vpack.c.bf16 %v709_v42, %v709_v42  ;;  %v1005_v52 = vpack.c.bf16 %v710_v43, %v710_v43  ;;  %v1007_v47 = vpack.c.bf16 %v711_v44, %v711_v44  ;;  %v1009_v53 = vpack.c.bf16 %v712_v45, %v712_v45 }
 0x1b2   : > { %815 = vst.msk [vmem:[%s311_s11 + $0x4] sm:$0xf] %vm813_vm2, %v1004_v46  ;;  %817 = vst.msk [vmem:[%s311_s11 + $0xc] sm:$0xf] %vm813_vm2, %v1006_v48 }
 0x1b3   : > { %819 = vst.msk [vmem:[%s311_s11 + $0x14] sm:$0xf] %vm813_vm2, %v1008_v49  ;;  %821 = vst.msk [vmem:[%s311_s11 + $0x1c] sm:$0xf] %vm813_vm2, %v1010_v50 }
 0x1b4   : > { %814 = vst.msk [vmem:[%s311_s11] sm:$0xf] %vm813_vm2, %v1003_v51  ;;  %816 = vst.msk [vmem:[%s311_s11 + $0x8] sm:$0xf] %vm813_vm2, %v1005_v52 }
 0x1b5   : > { %818 = vst.msk [vmem:[%s311_s11 + $0x10] sm:$0xf] %vm813_vm2, %v1007_v47  ;;  %820 = vst.msk [vmem:[%s311_s11 + $0x18] sm:$0xf] %vm813_vm2, %v1009_v53 }
 0x1c5   : > { %v464_v54 = vpop.trf.xlu0 }
 0x1c6   : > { %v480_v55 = vpack.c.bf16 %v464_v54, %v464_v54 }
 0x1c8   : > { %485 = vst.msk [vmem:[%s299_s8] sm:$0xf] %vm484_vm3, %v480_v55 }
 0x1c9   : > { %v465_v56 = vpop.trf.xlu0 }
 0x1ca   : > { %v481_v57 = vpack.c.bf16 %v465_v56, %v465_v56 }
 0x1cc   : > { %486 = vst.msk [vmem:[%s299_s8 + $0x4] sm:$0xf] %vm484_vm3, %v481_v57 }
 0x1cd   : > { %v466_v58 = vpop.trf.xlu0 }
 0x1ce   : > { %v482_v59 = vpack.c.bf16 %v466_v58, %v466_v58 }
 0x1d0   : > { %487 = vst.msk [vmem:[%s299_s8 + $0x8] sm:$0xf] %vm484_vm3, %v482_v59 }
 0x1d1   : > { %v467_v60 = vpop.trf.xlu0 }
 0x1d2   : > { %v483_v61 = vpack.c.bf16 %v467_v60, %v467_v60 }
 0x1d4   : > { %488 = vst.msk [vmem:[%s299_s8 + $0xc] sm:$0xf] %vm484_vm3, %v483_v61 }
 0x1d5   : > { %1211 = shalt.err (!%p1208_p13)
}
 0x1d6   : > { %s1212_s20 = scalar_lea.hbm %s1496_s15, 256  ;;  %s1216_s11 = scalar_lea.hbm %s1545_s5, 512 }
 0x1d7   : > { %p1213_p5 = scmp.ne.s32.totalorder %s1496_s15, %s1212_s20  ;;  %p1217_p8 = scmp.lt.s32.totalorder %s1496_s15, %s1545_s5 }
 0x1d8   : > { %p1218_p3 = scmp.lt.s32.totalorder %s1216_s11, %s1212_s20 }
 0x1d9   : > { %p1214_p0 = pnand %p1213_p5, %p1562_p1 }
 0x1da   : > { %p1219_p11 = por %p1218_p3, %p1217_p8 }
 0x1db   : > { %p1215_p4 = pneg %p1214_p0 }
 0x1dd   : > { %p1220_p10 = pnand %p1219_p11, %p1215_p4 }
 0x1df   : > { %1223 = shalt.err (!%p1220_p10)
}
 0x1e0   : > { %s1283_s10 = smov 64   ;;  %s1284_s13 = smov 4  }
 0x1e1   : > { %1044 = dma.vmem_to_hbm [thread:$0]  (%p1562_p1), %s1490_s27, 256, %s1496_s15, %s823_s16, %s1283_s10, %s1283_s10, %s1284_s13  }
 0x1e2 PF: > { %s859_s17 = sand.u32 1, %s1254_s21   ;;  %p1563_p2 = scmp.ne.s32.totalorder %s1552_s28, 0 }
 0x1e3   : > { %p1564_p6 = scmp.ge.s32.totalorder %s1266_s24, 2  ;;  %s860_s25 = scalar_lea.sflag [#allocation4], %s859_s17 }
 0x1e5   : > { %p1058_p12 = pnand %p1564_p6, %p1563_p2 }
 0x1e7   : > { %p1059_p7 = pneg %p1058_p12 }
 0x1e9   : > { %1249 = dma.done.wait (%p1059_p7), %s860_s25, 256  }
 0x1ea   : > { %1251 = vsyncadd (%p1059_p7), %s860_s25, 4294967040  ;;  %p21_p9 = scmp.ge.s32.totalorder %s1392_s19, 4   ;;  %s1565_s21 = smov %s1258_s22 }
 0x1eb   : > { %s1566_s22 = smov %s1262_s23  ;;  %s1567_s23 = smov %s1408_s7 }
 0x1ec   : > { %s1568_s24 = smov %s1392_s19  ;;  %23 = sbr.rel (!%p21_p9) target bundleno = 6 (0x6), region = 105 }
 0x1f1   :  { %873 = vsyncpa [#allocation3], 1 }
 0x1f2   :  { %875 = vsyncpa [#allocation3 + $0x1], 1 }
 0x1f3   :  { %876 = vsyncpa [#allocation6], 1 }
 0x1f4   :  { %877 = vsyncpa [#allocation4], 1 }
 0x1f5   :  { %879 = vsyncpa [#allocation4 + $0x1], 1 }

</bundles_post_ra>
